<compile_context>
chip_gen: v6e
topology: v6e:2x2x1
jax: 0.10.0
libtpu: 0.0.40
codegen_flags: <defaults>
</compile_context>

<pallas_src>
import functools

import jax
import jax.numpy as jnp
from jax import lax
from jax.experimental import pallas as pl
from jax.experimental.pallas import tpu as pltpu

LANES = 128


def _chip_defaults():
    kind = ""
    try:
        kind = jax.devices()[0].device_kind.lower()
    except Exception:
        pass
    compact = kind.replace(" ", "")
    is_v7 = ("v7" in compact) or ("tpu7" in compact)
    is_v5e = ("v5e" in compact) or ("v5lite" in compact)
    num_splits = 2 if is_v7 else 1                  # 2 TCs only on v7x
    tile_rows = 4096 if is_v5e else 8192            # 2 / 4 MiB per f32 operand
    vmem_limit = (48 << 20) if is_v7 else (64 << 20)
    return is_v7, num_splits, tile_rows, vmem_limit


_IS_V7, _NUM_CORE_SPLITS, _TILE_ROWS, _VMEM_LIMIT = _chip_defaults()


def _flatten_to_lanes(x):
    """Flatten row-major and view as (rows, 128). Free when x.size % 128 == 0."""
    flat = x.reshape(-1)
    rem = flat.shape[0] % LANES
    if rem != 0:
        # TODO(synk): rare size%128!=0 path still materializes a padded HBM copy;
        # a zero-copy version needs a manual-DMA (pl.ANY) tail or 1-D blocks.
        flat = jnp.pad(flat, (0, LANES - rem))
    return flat.reshape(-1, LANES)


@functools.partial(
    jax.jit,
    static_argnames=("loss_weight", "eps", "tile_rows", "num_core_splits"))
def l1_disp_loss(prediction_disp, inv_depth, mask, *, loss_weight=1.0, eps=1e-6,
                 tile_rows=None, num_core_splits=None):
    tile_rows = _TILE_ROWS if tile_rows is None else tile_rows
    num_splits = _NUM_CORE_SPLITS if num_core_splits is None else num_core_splits

    # Inputs stay in their native dtype (f32/bf16/int8/...); cast happens in VMEM.
    pred2 = _flatten_to_lanes(prediction_disp)
    inv2 = _flatten_to_lanes(inv_depth)
    mask2 = _flatten_to_lanes(mask)

    rows = pred2.shape[0]
    tr = tile_rows if rows >= tile_rows else rows   # full extent for tiny inputs
    ar = 8 if tr % 8 == 0 else 1                    # accumulator sublane depth
    nb = pl.cdiv(rows, tr)                          # total row-blocks
    nbpc = pl.cdiv(nb, num_splits)                  # row-blocks per core split
    rows_rem = rows % tr                            # valid rows in the tail block
    needs_tail_mask = rows_rem != 0                 # static Python check
    has_dup = num_splits * nbpc > nb                # clamped duplicate block exists

    def in_map(c, i):
        # Clamp out-of-range (duplicate) blocks onto the last real block; their
        # contribution is skipped inside the kernel via pl.when(blk < nb).
        return (jnp.minimum(c * nbpc + i, nb - 1), 0)

    def kernel(pred_ref, inv_ref, mask_ref, out_ref, acc_ref):
        i = pl.program_id(1)
        blk = pl.program_id(0) * nbpc + i           # un-clamped logical block id

        @pl.when(i == 0)
        def _init():
            acc_ref[...] = jnp.zeros_like(acc_ref)

        def fold(x):
            # (tr, LANES) -> (ar, LANES); tile-aligned reshape-sum = pure VPU adds.
            if ar == 1:
                return jnp.sum(x, axis=0, keepdims=True)
            return jnp.sum(x.reshape(tr // ar, ar, LANES), axis=0)

        def accumulate(p, t, m):
            acc_ref[0 * ar:1 * ar, :] += fold(jnp.abs(p - t) * m)
            acc_ref[1 * ar:2 * ar, :] += fold(m)
            acc_ref[2 * ar:3 * ar, :] += fold(p)

        def load_f32():
            return (pred_ref[...].astype(jnp.float32),
                    inv_ref[...].astype(jnp.float32),
                    mask_ref[...].astype(jnp.float32))

        if not needs_tail_mask and not has_dup:
            # Fully regular grid: steady-state fast path, no masking at all.
            accumulate(*load_f32())
        elif needs_tail_mask:
            is_tail = blk == nb - 1

            @pl.when(jnp.logical_and(blk < nb, jnp.logical_not(is_tail)))
            def _full():
                accumulate(*load_f32())

            @pl.when(is_tail)
            def _tail():
                # Runs on exactly one block: iota/select cost is negligible here.
                p, t, m = load_f32()
                valid = lax.broadcasted_iota(jnp.int32, (tr, LANES), 0) < rows_rem
                accumulate(jnp.where(valid, p, 0.0),
                           jnp.where(valid, t, 0.0),
                           jnp.where(valid, m, 0.0))
        else:
            # Only clamped duplicate blocks need skipping; real blocks are full.
            @pl.when(blk < nb)
            def _full():
                accumulate(*load_f32())

        @pl.when(i == nbpc - 1)
        def _finalize():
            out_ref[0] = acc_ref[...]               # single (3*ar,128) store

    tile_spec = pl.BlockSpec((tr, LANES), in_map)
    lead_sem = pltpu.CORE_PARALLEL if (num_splits > 1 and _IS_V7) else pltpu.ARBITRARY

    partials = pl.pallas_call(
        kernel,
        out_shape=jax.ShapeDtypeStruct((num_splits, 3 * ar, LANES), jnp.float32),
        grid_spec=pltpu.PrefetchScalarGridSpec(
            num_scalar_prefetch=0,
            grid=(num_splits, nbpc),
            in_specs=[tile_spec, tile_spec, tile_spec],
            out_specs=pl.BlockSpec((1, 3 * ar, LANES), lambda c, i: (c, 0, 0)),
            scratch_shapes=[pltpu.VMEM((3 * ar, LANES), jnp.float32)],
        ),
        compiler_params=pltpu.CompilerParams(
            dimension_semantics=(lead_sem, pltpu.ARBITRARY),
            vmem_limit_bytes=_VMEM_LIMIT,
        ),
    )(pred2, inv2, mask2)

    # Tiny epilogue reduction (num_splits * 3*ar * 128 floats) in plain XLA.
    sums = jnp.sum(partials.reshape(num_splits, 3, ar, LANES), axis=(0, 2, 3))
    sum_diff, sum_mask, sum_pred = sums[0], sums[1], sums[2]
    loss = sum_diff / (sum_mask + eps)
    # nan/inf guard mirroring `loss = 0 * torch.sum(prediction_disp)` (keeps the
    # corner-case semantics: 0 * inf/nan prediction-sum still yields nan).
    loss = jnp.where(jnp.isnan(loss) | jnp.isinf(loss), 0.0 * sum_pred, loss)
    return loss * loss_weight


if __name__ == "__main__":
    key = jax.random.PRNGKey(0)
    k1, k2, k3 = jax.random.split(key, 3)

    # Disparity maps: NCHW, single channel.
    B, C, H, W = 2, 1, 32, 32
    prediction_disp = jax.random.uniform(k1, (B, C, H, W), jnp.float32, 0.01, 2.0)
    inv_depth = jax.random.uniform(k2, (B, C, H, W), jnp.float32, 0.01, 2.0)
    mask = (jax.random.uniform(k3, (B, C, H, W)) > 0.3).astype(jnp.float32)

    loss = jax.block_until_ready(
        l1_disp_loss(prediction_disp, inv_depth, mask, loss_weight=1.0))
    loss_ref = (jnp.sum(jnp.abs(prediction_disp - inv_depth) * mask)
                / (jnp.sum(mask) + 1e-6))
    assert jnp.allclose(loss, loss_ref, rtol=1e-5, atol=1e-6), (loss, loss_ref)

    # Check 2: ragged tail + forced 2-way core split -> exercises the pl.when
    # masked-tail path and the clamped-duplicate-block skip on any chip.
    Hs, Ws = 40, 64
    p2 = jax.random.uniform(k1, (1, 1, Hs, Ws), jnp.float32, 0.01, 2.0)
    t2 = jax.random.uniform(k2, (1, 1, Hs, Ws), jnp.float32, 0.01, 2.0)
    m2 = (jax.random.uniform(k3, (1, 1, Hs, Ws)) > 0.5).astype(jnp.float32)
    loss2 = jax.block_until_ready(
        l1_disp_loss(p2, t2, m2, tile_rows=8, num_core_splits=2))
    loss2_ref = jnp.sum(jnp.abs(p2 - t2) * m2) / (jnp.sum(m2) + 1e-6)
    assert jnp.allclose(loss2, loss2_ref, rtol=1e-5, atol=1e-6), (loss2, loss2_ref)

    # Check 3: narrow input dtypes streamed directly (bf16 operands, int8 mask).
    p3 = prediction_disp.astype(jnp.bfloat16)
    t3 = inv_depth.astype(jnp.bfloat16)
    m3 = mask.astype(jnp.int8)
    loss3 = jax.block_until_ready(l1_disp_loss(p3, t3, m3))
    loss3_ref = (jnp.sum(jnp.abs(p3.astype(jnp.float32) - t3.astype(jnp.float32))
                         * mask) / (jnp.sum(mask) + 1e-6))
    assert jnp.allclose(loss3, loss3_ref, rtol=2e-2, atol=1e-3), (loss3, loss3_ref)

    print("KERNEL_OK")
</pallas_src>

<mosaic_0001>
module attributes {stable_mosaic.version = 11 : i64} {
  func.func @kernel(%arg0: i32, %arg1: i32, %arg2: memref<16x128xf32, #tpu.memory_space<vmem>>, %arg3: memref<16x128xf32, #tpu.memory_space<vmem>>, %arg4: memref<16x128xf32, #tpu.memory_space<vmem>>, %arg5: memref<1x24x128xf32, #tpu.memory_space<vmem>>, %arg6: memref<24x128xf32, #tpu.memory_space<vmem>>) attributes {dimension_semantics = [#tpu.dimension_semantics<arbitrary>, #tpu.dimension_semantics<arbitrary>], iteration_bounds = array<i64: 1, 1>, scalar_prefetch = 0 : i64, scratch_operands = 1 : i64, tpu.core_type = #tpu.core_type<tc>, window_params = [{transform_indices = @transform_0, window_bounds = array<i64: 16, 128>}, {transform_indices = @transform_1, window_bounds = array<i64: 16, 128>}, {transform_indices = @transform_2, window_bounds = array<i64: 16, 128>}, {transform_indices = @transform_3, window_bounds = array<i64: 1, 24, 128>}]} {
    %c0_i32 = arith.constant 0 : i32
    %0 = arith.cmpi eq, %arg1, %c0_i32 : i32
    %1 = arith.extui %0 : i1 to i32
    %c0_i32_0 = arith.constant 0 : i32
    %2 = arith.cmpi ne, %1, %c0_i32_0 : i32
    scf.if %2 {
      %cst_20 = arith.constant 0.000000e+00 : f32
      %27 = vector.broadcast %cst_20 : f32 to vector<24x128xf32>
      %c0_21 = arith.constant 0 : index
      %c0_22 = arith.constant 0 : index
      %28 = vector.load %arg6[%c0_21, %c0_22] : memref<24x128xf32, #tpu.memory_space<vmem>>, vector<24x128xf32>
      tpu.vector_store %arg6[%c0_21, %c0_22], %27 {strides = array<i32>} : memref<24x128xf32, #tpu.memory_space<vmem>>, vector<24x128xf32>,
    } else {
    }
    %c0 = arith.constant 0 : index
    %c0_1 = arith.constant 0 : index
    %3 = vector.load %arg2[%c0, %c0_1] : memref<16x128xf32, #tpu.memory_space<vmem>>, vector<16x128xf32>
    %c0_2 = arith.constant 0 : index
    %c0_3 = arith.constant 0 : index
    %4 = vector.load %arg3[%c0_2, %c0_3] : memref<16x128xf32, #tpu.memory_space<vmem>>, vector<16x128xf32>
    %c0_4 = arith.constant 0 : index
    %c0_5 = arith.constant 0 : index
    %5 = vector.load %arg4[%c0_4, %c0_5] : memref<16x128xf32, #tpu.memory_space<vmem>>, vector<16x128xf32>
    %c0_6 = arith.constant 0 : index
    %c0_7 = arith.constant 0 : index
    %6 = vector.load %arg6[%c0_6, %c0_7] : memref<24x128xf32, #tpu.memory_space<vmem>>, vector<8x128xf32>
    %7 = arith.subf %3, %4 : vector<16x128xf32>
    %8 = math.absf %7 : vector<16x128xf32>
    %9 = arith.mulf %8, %5 : vector<16x128xf32>
    %10 = vector.shape_cast %9 : vector<16x128xf32> to vector<2x8x128xf32>
    %cst = arith.constant dense<0.000000e+00> : vector<8x128xf32>
    %11 = vector.multi_reduction <add>, %10, %cst [0] : vector<2x8x128xf32> to vector<8x128xf32>
    %12 = arith.addf %6, %11 : vector<8x128xf32>
    %c0_8 = arith.constant 0 : index
    %c0_9 = arith.constant 0 : index
    %13 = vector.load %arg6[%c0_8, %c0_9] : memref<24x128xf32, #tpu.memory_space<vmem>>, vector<8x128xf32>
    tpu.vector_store %arg6[%c0_8, %c0_9], %12 {strides = array<i32>} : memref<24x128xf32, #tpu.memory_space<vmem>>, vector<8x128xf32>,
    %c8 = arith.constant 8 : index
    %c0_10 = arith.constant 0 : index
    %14 = vector.load %arg6[%c8, %c0_10] : memref<24x128xf32, #tpu.memory_space<vmem>>, vector<8x128xf32>
    %15 = vector.shape_cast %5 : vector<16x128xf32> to vector<2x8x128xf32>
    %cst_11 = arith.constant dense<0.000000e+00> : vector<8x128xf32>
    %16 = vector.multi_reduction <add>, %15, %cst_11 [0] : vector<2x8x128xf32> to vector<8x128xf32>
    %17 = arith.addf %14, %16 : vector<8x128xf32>
    %c8_12 = arith.constant 8 : index
    %c0_13 = arith.constant 0 : index
    %18 = vector.load %arg6[%c8_12, %c0_13] : memref<24x128xf32, #tpu.memory_space<vmem>>, vector<8x128xf32>
    tpu.vector_store %arg6[%c8_12, %c0_13], %17 {strides = array<i32>} : memref<24x128xf32, #tpu.memory_space<vmem>>, vector<8x128xf32>,
    %c16 = arith.constant 16 : index
    %c0_14 = arith.constant 0 : index
    %19 = vector.load %arg6[%c16, %c0_14] : memref<24x128xf32, #tpu.memory_space<vmem>>, vector<8x128xf32>
    %20 = vector.shape_cast %3 : vector<16x128xf32> to vector<2x8x128xf32>
    %cst_15 = arith.constant dense<0.000000e+00> : vector<8x128xf32>
    %21 = vector.multi_reduction <add>, %20, %cst_15 [0] : vector<2x8x128xf32> to vector<8x128xf32>
    %22 = arith.addf %19, %21 : vector<8x128xf32>
    %c16_16 = arith.constant 16 : index
    %c0_17 = arith.constant 0 : index
    %23 = vector.load %arg6[%c16_16, %c0_17] : memref<24x128xf32, #tpu.memory_space<vmem>>, vector<8x128xf32>
    tpu.vector_store %arg6[%c16_16, %c0_17], %22 {strides = array<i32>} : memref<24x128xf32, #tpu.memory_space<vmem>>, vector<8x128xf32>,
    %c0_i32_18 = arith.constant 0 : i32
    %24 = arith.cmpi eq, %arg1, %c0_i32_18 : i32
    %25 = arith.extui %24 : i1 to i32
    %c0_i32_19 = arith.constant 0 : i32
    %26 = arith.cmpi ne, %25, %c0_i32_19 : i32
    scf.if %26 {
      %c0_20 = arith.constant 0 : index
      %c0_21 = arith.constant 0 : index
      %27 = vector.load %arg6[%c0_20, %c0_21] : memref<24x128xf32, #tpu.memory_space<vmem>>, vector<24x128xf32>
      %c0_22 = arith.constant 0 : index
      %c0_23 = arith.constant 0 : index
      %c0_24 = arith.constant 0 : index
      %28 = vector.load %arg5[%c0_22, %c0_23, %c0_24] : memref<1x24x128xf32, #tpu.memory_space<vmem>>, vector<1x24x128xf32>
      %29 = vector.shape_cast %28 : vector<1x24x128xf32> to vector<24x128xf32>
      %30 = vector.shape_cast %27 : vector<24x128xf32> to vector<1x24x128xf32>
      tpu.vector_store %arg5[%c0_22, %c0_23, %c0_24], %30 {strides = array<i32>} : memref<1x24x128xf32, #tpu.memory_space<vmem>>, vector<1x24x128xf32>,
    } else {
    }
    return
  }
  func.func @transform_0(%arg0: i32, %arg1: i32) -> (i32, i32) {
    %c1_i32 = arith.constant 1 : i32
    %0 = arith.muli %arg0, %c1_i32 : i32
    %1 = arith.addi %0, %arg1 : i32
    %c0_i32 = arith.constant 0 : i32
    %2 = arith.minsi %1, %c0_i32 : i32
    %c0_i32_0 = arith.constant 0 : i32
    %c0_i32_1 = arith.constant 0 : i32
    return %2, %c0_i32_0 : i32, i32
  }
  func.func @transform_1(%arg0: i32, %arg1: i32) -> (i32, i32) {
    %c1_i32 = arith.constant 1 : i32
    %0 = arith.muli %arg0, %c1_i32 : i32
    %1 = arith.addi %0, %arg1 : i32
    %c0_i32 = arith.constant 0 : i32
    %2 = arith.minsi %1, %c0_i32 : i32
    %c0_i32_0 = arith.constant 0 : i32
    %c0_i32_1 = arith.constant 0 : i32
    return %2, %c0_i32_0 : i32, i32
  }
  func.func @transform_2(%arg0: i32, %arg1: i32) -> (i32, i32) {
    %c1_i32 = arith.constant 1 : i32
    %0 = arith.muli %arg0, %c1_i32 : i32
    %1 = arith.addi %0, %arg1 : i32
    %c0_i32 = arith.constant 0 : i32
    %2 = arith.minsi %1, %c0_i32 : i32
    %c0_i32_0 = arith.constant 0 : i32
    %c0_i32_1 = arith.constant 0 : i32
    return %2, %c0_i32_0 : i32, i32
  }
  func.func @transform_3(%arg0: i32, %arg1: i32) -> (i32, i32, i32) {
    %c0_i32 = arith.constant 0 : i32
    %c0_i32_0 = arith.constant 0 : i32
    %c0_i32_1 = arith.constant 0 : i32
    return %arg0, %c0_i32, %c0_i32_0 : i32, i32, i32
  }
}

</mosaic_0001>

<bundles_post_ra>
// kernel: l1_disp_loss.1
= control target key start
LH: loop header
LB: loop body
LE: loop exit
PB: predicated region body
PF: predicated region fallthrough
CT: control target
= control target key end

     0   :  { %s219_s0 = inlined_call_operand.vmem [shape: f32[16,128], index: 0, kind: input, shape index: {}]   ;;  %s220_s1 = inlined_call_operand.vmem [shape: f32[16,128], index: 1, kind: input, shape index: {}]   ;;  %s221_s2 = inlined_call_operand.vmem [shape: f32[16,128], index: 2, kind: input, shape index: {}]   ;;  %s222_s3 = inlined_call_operand.vmem [shape: f32[1,24,128], index: 3, kind: output, shape index: {}]  }
   0x1   :  { %v117_v0 = vld [vmem:[%s219_s0] sm:$0xff]  ;;  %v118_v1 = vld [vmem:[%s219_s0 + $0x8] sm:$0xff] }
   0x2   :  { %v119_v2 = vld [vmem:[%s220_s1] sm:$0xff]  ;;  %v120_v3 = vld [vmem:[%s220_s1 + $0x8] sm:$0xff]  ;;  %v138_v7 = vadd.f32 %v118_v1, %v117_v0 }
   0x3   :  { %v121_v4 = vld [vmem:[%s221_s2] sm:$0xff]  ;;  %v122_v5 = vld [vmem:[%s221_s2 + $0x8] sm:$0xff]  ;;  %v124_v6 = vsub.f32 %v117_v0, %v119_v2  ;;  %v125_v8 = vsub.f32 %v118_v1, %v120_v3 }
   0x4   :  { %v134_v9 = vadd.f32 %v122_v5, %v121_v4  ;;  %149 = vst [vmem:[%s222_s3 + $0x10] sm:$0xff] %v138_v7 }
   0x5   :  { %v126_v10 = vand.u32 2147483647, %v124_v6  ;;  %v127_v11 = vand.u32 2147483647, %v125_v8 }
   0x6   :  { %148 = vst [vmem:[%s222_s3 + $0x8] sm:$0xff] %v134_v9 }
   0x7   :  { %v128_v12 = vmul.f32 %v126_v10, %v121_v4  ;;  %v129_v13 = vmul.f32 %v127_v11, %v122_v5 }
   0x9   :  { %v130_v14 = vadd.f32 %v129_v13, %v128_v12 }
   0xb   :  { %147 = vst [vmem:[%s222_s3] sm:$0xff] %v130_v14 }

</bundles_post_ra>
